<compile_context>
chip_gen: v6e
topology: v6e:2x2x1
jax: 0.10.0
libtpu: 0.0.40
codegen_flags: <defaults>
</compile_context>

<pallas_src>
import jax
import jax.numpy as jnp
from jax.experimental import pallas as pl
from jax.experimental.pallas import tpu as pltpu


# Below this many obs elements, pallas_call launch + per-step grid overhead
# dominates; just use the fused XLA dot.
_PALLAS_MIN_ELEMENTS = 1 << 20


def _linear_reward_kernel(obs_ref, w_ref, out_ref):
    # obs_ref: (TB, D) in caller dtype; w_ref: (1, D) f32 (resident);
    # out_ref: (1, TB) f32 (lane-dense).
    x = obs_ref[...].astype(jnp.float32)        # in-register upcast only
    w = w_ref[...]                               # (1, D) broadcasts over rows
    r = jnp.sum(x * w, axis=1)                   # (TB,) per-row reduce (XLU)
    out_ref[...] = r.reshape(1, -1)              # lane-dense store


def _pick_batch_tile(B: int, D: int, itemsize: int) -> int:
    """Batch tile: full batch for small B, else a multiple of 128 with
    ~4 MiB per (double-buffered) obs buffer."""
    if B <= 128:
        return B                                 # single full block along batch
    budget = 4 * 1024 * 1024                     # per buffer; Pallas double-buffers
    tb = budget // max(1, D * itemsize)
    tb = max(128, min(tb, 2048, B))
    return (tb // 128) * 128


def linear_reward_model(obs: jax.Array, w: jax.Array, *, force_pallas: bool = False) -> jax.Array:
    """Forward pass of LinearRewardModel.

    obs: (B, D) float32 or bfloat16
    w:   (D,)   weights of the bias-free Linear(obs_dim, 1)
    returns: (B,) float32
    """
    B, D = obs.shape
    w = jnp.asarray(w)

    if not force_pallas and B * D < _PALLAS_MIN_ELEMENTS:
        # Tiny shapes: a fused XLA dot beats any pallas_call launch.
        return jnp.dot(obs, w.astype(obs.dtype), preferred_element_type=jnp.float32)

    w_row = w.reshape(1, D).astype(jnp.float32)  # lane-dense, tiny, resident
    tb = _pick_batch_tile(B, D, jnp.dtype(obs.dtype).itemsize)
    grid = (pl.cdiv(B, tb),)

    out = pl.pallas_call(
        _linear_reward_kernel,
        out_shape=jax.ShapeDtypeStruct((1, B), jnp.float32),
        grid_spec=pltpu.PrefetchScalarGridSpec(
            num_scalar_prefetch=0,
            grid=grid,
            in_specs=[
                pl.BlockSpec((tb, D), lambda i: (i, 0)),   # streamed obs tiles
                pl.BlockSpec((1, D), lambda i: (0, 0)),    # weight stays resident
            ],
            out_specs=pl.BlockSpec((1, tb), lambda i: (0, i)),  # lane-dense output
        ),
        compiler_params=pltpu.CompilerParams(
            dimension_semantics=("parallel",),             # megacore-shardable on v7x
        ),
    )(obs, w_row)

    # torch.squeeze(..., 1): linear output (B, 1) -> (B,).  Our kernel already
    # produced the squeezed values as a (1, B) row; drop the leading axis.
    return jnp.squeeze(out, axis=0)


if __name__ == "__main__":
    key = jax.random.PRNGKey(0)
    k_obs, k_w = jax.random.split(key)

    batch, obs_dim = 8, 32

    # Deterministic "parameters": mimic nn.Linear(obs_dim, 1, bias=False)
    # init range uniform(-1/sqrt(obs_dim), 1/sqrt(obs_dim)).
    bound = 1.0 / jnp.sqrt(jnp.float32(obs_dim))
    w = jax.random.uniform(
        k_w, (obs_dim,), dtype=jnp.float32, minval=-bound, maxval=bound
    )
    obs = jax.random.normal(k_obs, (batch, obs_dim), dtype=jnp.float32)

    # 1) Baseline f32, single full-batch tile.
    y = jax.block_until_ready(linear_reward_model(obs, w, force_pallas=True))
    y_ref = obs @ w
    assert y.shape == (batch,)
    assert jnp.allclose(y, y_ref, atol=1e-5, rtol=1e-5)

    # 2) Batch > 128 and not a multiple of the tile (exercises multi-step grid,
    #    the resident weight across iterations, and the partial last block).
    obs2 = jax.random.normal(jax.random.PRNGKey(1), (300, obs_dim), dtype=jnp.float32)
    y2 = jax.block_until_ready(linear_reward_model(obs2, w, force_pallas=True))
    assert y2.shape == (300,)
    assert jnp.allclose(y2, obs2 @ w, atol=1e-5, rtol=1e-5)

    # 3) bf16 obs streamed as-is (half HBM traffic), f32 accumulation in-kernel.
    obs_bf16 = obs.astype(jnp.bfloat16)
    y3 = jax.block_until_ready(linear_reward_model(obs_bf16, w, force_pallas=True))
    y3_ref = obs_bf16.astype(jnp.float32) @ w
    assert y3.shape == (batch,)
    assert jnp.allclose(y3, y3_ref, atol=1e-3, rtol=1e-3)

    print("KERNEL_OK")
</pallas_src>

<mosaic_0001>
module attributes {stable_mosaic.version = 11 : i64} {
  func.func @_linear_reward_kernel(%arg0: i32, %arg1: memref<8x32xf32, #tpu.memory_space<vmem>>, %arg2: memref<1x32xf32, #tpu.memory_space<vmem>>, %arg3: memref<1x8xf32, #tpu.memory_space<vmem>>) attributes {dimension_semantics = [#tpu.dimension_semantics<parallel>], iteration_bounds = array<i64: 1>, scalar_prefetch = 0 : i64, scratch_operands = 0 : i64, tpu.core_type = #tpu.core_type<tc>, window_params = [{transform_indices = @transform_0, window_bounds = array<i64: 8, 32>}, {pipeline_mode = #tpu.pipeline_mode<synchronous>, transform_indices = @transform_1, window_bounds = array<i64: 1, 32>}, {transform_indices = @transform_2, window_bounds = array<i64: 1, 8>}]} {
    %c0 = arith.constant 0 : index
    %c0_0 = arith.constant 0 : index
    %0 = vector.load %arg1[%c0, %c0_0] : memref<8x32xf32, #tpu.memory_space<vmem>>, vector<8x32xf32>
    %c0_1 = arith.constant 0 : index
    %c0_2 = arith.constant 0 : index
    %1 = vector.load %arg2[%c0_1, %c0_2] : memref<1x32xf32, #tpu.memory_space<vmem>>, vector<1x32xf32>
    %2 = vector.broadcast %1 : vector<1x32xf32> to vector<8x32xf32>
    %3 = arith.mulf %0, %2 : vector<8x32xf32>
    %cst = arith.constant dense<0.000000e+00> : vector<8xf32>
    %4 = vector.multi_reduction <add>, %3, %cst [1] : vector<8x32xf32> to vector<8xf32>
    %5 = vector.shape_cast %4 : vector<8xf32> to vector<1x8xf32>
    %c0_3 = arith.constant 0 : index
    %c0_4 = arith.constant 0 : index
    %6 = vector.load %arg3[%c0_3, %c0_4] : memref<1x8xf32, #tpu.memory_space<vmem>>, vector<1x8xf32>
    tpu.vector_store %arg3[%c0_3, %c0_4], %5 {strides = array<i32>} : memref<1x8xf32, #tpu.memory_space<vmem>>, vector<1x8xf32>,
    return
  }
  func.func @transform_0(%arg0: i32) -> (i32, i32) {
    %c0_i32 = arith.constant 0 : i32
    %c0_i32_0 = arith.constant 0 : i32
    return %arg0, %c0_i32 : i32, i32
  }
  func.func @transform_1(%arg0: i32) -> (i32, i32) {
    %c0_i32 = arith.constant 0 : i32
    %c0_i32_0 = arith.constant 0 : i32
    %c0_i32_1 = arith.constant 0 : i32
    return %c0_i32, %c0_i32_0 : i32, i32
  }
  func.func @transform_2(%arg0: i32) -> (i32, i32) {
    %c0_i32 = arith.constant 0 : i32
    %c0_i32_0 = arith.constant 0 : i32
    return %c0_i32, %arg0 : i32, i32
  }
}

</mosaic_0001>

<bundles_post_ra>
// kernel: tpu_custom_call.1
= control target key start
LH: loop header
LB: loop body
LE: loop exit
PB: predicated region body
PF: predicated region fallthrough
CT: control target
= control target key end

     0   :  { %7 = vsyncpa [#allocation3], 0  ;;  %s135_s0 = inlined_call_operand.hbm [shape: f32[8,32], index: 0, kind: input, shape index: {}]   ;;  %s136_s1 = inlined_call_operand.vmem [shape: f32[1,32], index: 1, kind: input, shape index: {}]   ;;  %s137_s2 = inlined_call_operand.hbm [shape: f32[1,8], index: 2, kind: output, shape index: {}]  }
   0x1   :  { %8 = vsyncpa [#allocation4], 0  ;;  %s109_s9 = smov [#allocation2]  }
   0x2   :  { %s15_s10 = sshll.u32 %s109_s9, 4  ;;  %s16_s10 = int_to_ptr.vmem [resolvable:$true] %s15_s10 }
   0x3   :  { %s73_s11 = scalar_lea.vmem %s16_s10, 128  ;;  %p78_p1 = scmp.lt.s32.totalorder %s16_s10, %s16_s10 }
   0x4   :  { %p74_p0 = scmp.ne.s32.totalorder %s16_s10, %s73_s11  ;;  %p79_p2 = scmp.lt.s32.totalorder %s73_s11, %s73_s11 }
   0x6   :  { %p80_p3 = por %p79_p2, %p78_p1 }
   0x8   :  { %p81_p4 = pnand %p80_p3, %p74_p0 }
   0xa   :  { %84 = shalt.err (!%p81_p4)
}
   0xb   :  { %18 = dma.hbm_to_vmem [thread:$0]  %s135_s0, 128, %s16_s10, [#allocation3]  }
   0xc   :  { %105 = dma.done.wait [#allocation3], 128  }
   0xd   :  { %106 = vsyncadd [#allocation3], 4294967168  ;;  %v24_v0 = vld [vmem:[#allocation2] sm:$0xff]  ;;  %vm33_vm0 = vcmask 261120   ;;  %v38_v4 = vlaneseq  ;;  %s110_s16 = smov [#allocation5]   ;;  %vm45_vm1 = vcmask 57344  }
   0xe   :  { %v62_v1 = vld [vmem:[%s136_s1] ss:$0 sm:$0xff]  ;;  %s53_s17 = sshll.u32 %s110_s16, 4  ;;  %s54_s17 = int_to_ptr.vmem [resolvable:$true] %s53_s17 }
   0xf   :  { %v32_v2 = vmul.f32 %v62_v1, %v24_v0  ;;  %v39_v5 = vand.u32 127, %v38_v4  ;;  %v41_v6 = vshrl.u32 %v38_v4, 7  ;;  %s85_s0 = scalar_lea.vmem %s54_s17, 16  ;;  %s89_s18 = scalar_lea.vmem %s54_s17, 32 }
  0x10   :  { %p86_p5 = scmp.ne.s32.totalorder %s54_s17, %s85_s0  ;;  %p90_p6 = scmp.lt.s32.totalorder %s54_s17, %s54_s17 }
  0x11   :  { %v34_v3 = vsel %vm33_vm0, %v32_v2, 0.0  ;;  %v42_v7 = vsub.s32 %v39_v5, %v41_v6  ;;  %p91_p7 = scmp.lt.s32.totalorder %s89_s18, %s85_s0 }
  0x12   :  { %35 = vadd.xlane.f32.xlu0 %v34_v3 }
  0x13   :  { %p92_p8 = por %p91_p7, %p90_p6 }
  0x15   :  { %p93_p9 = pnand %p92_p8, %p86_p5 }
  0x9b   :  { %v36_v8 = vpop.xlane.xlu0 %35 }
  0x9c   :  { %v43_v9 = vrot.slane %v36_v8, %v42_v7 }
  0x9e   :  { %46 = vst.msk [vmem:[#allocation5] sm:$0x1] %vm45_vm1, %v43_v9 }
  0x9f   :  { %96 = shalt.err (!%p93_p9)
}
  0xa0   :  { %56 = dma.vmem_to_hbm [thread:$0]  %s54_s17, 16, %s137_s2, [#allocation4]  }
  0xa1   :  { %107 = dma.done.wait [#allocation4], 16  }
  0xa2   :  { %108 = vsyncadd [#allocation4], 4294967280 }
  0xa3   :  { %60 = vsyncpa [#allocation3], 1 }
  0xa4   :  { %61 = vsyncpa [#allocation4], 1 }

</bundles_post_ra>
